<compile_context>
chip_gen: v5e
topology: v5e:2x2
jax: 0.10.0
libtpu: 0.0.40
codegen_flags: <defaults>
</compile_context>

<pallas_src>
import functools

import jax
import jax.numpy as jnp
from jax.experimental import pallas as pl
from jax.experimental.pallas import tpu as pltpu


def _ln_kernel(x_ref, std_scale_ref, mean_scale_ref, o_ref, *, D, eps):
    x = x_ref[...].astype(jnp.float32)                        # (TM, D)
    mean = jnp.mean(x, axis=-1, keepdims=True)                # (TM, 1)
    centered = x - mean
    # torch.std default is the unbiased estimator (divide by D-1); keep the centered
    # two-pass form for numerical stability (do NOT switch to E[x^2]-E[x]^2).
    var = jnp.sum(centered * centered, axis=-1, keepdims=True) * (1.0 / (D - 1))
    std = jnp.sqrt(var)
    # eps is added to std (not var), matching the PyTorch module. Reciprocal runs on the
    # EUP slot; exact (approx=False) to preserve the 1e-5 tolerance.
    inv = pl.reciprocal(std + eps, approx=False)              # (TM, 1)
    normed = centered * inv
    o_ref[...] = (std_scale_ref[...] * normed + mean_scale_ref[...]).astype(o_ref.dtype)


def _round_up(n, m):
    return ((n + m - 1) // m) * m


def _pick_row_tile(N, D, itemsize, requested):
    """Static (Python-int) row-tile selection."""
    # Per-row VMEM footprint: double-buffered input + output blocks in the native dtype
    # plus ~3 f32 temporaries (x-cast, centered, normed). Keep under ~32 MiB so the
    # explicit vmem_limit below is comfortably satisfied on v5e/v6e/v7x.
    per_row_bytes = D * (4 * itemsize + 3 * 4)
    budget = 32 << 20
    rt = max(8, (budget // max(per_row_bytes, 1)) // 8 * 8)
    rt = min(rt, requested)
    rt = min(rt, _round_up(N, 8))
    rt = max(8, rt)
    # Keep >= 2 grid steps when possible so megacore can shard rows across TensorCores.
    if N > 8:
        rt = min(rt, max(8, _round_up(pl.cdiv(N, 2), 8)))
    return rt


def ln_pallas(x, std_scale, mean_scale, eps=1e-9, row_tile=2048):
    """x: [..., D] -> same shape. Per-row LN (unbiased std) fused in a single Pallas pass."""
    orig_shape = x.shape
    D = orig_shape[-1]
    x2 = x.reshape(-1, D)
    N = x2.shape[0]

    itemsize = jnp.dtype(x.dtype).itemsize
    rt = _pick_row_tile(N, D, itemsize, row_tile)
    grid = (pl.cdiv(N, rt),)

    # VMEM budget: double-buffered in + out blocks + f32 intermediates + scales + slack.
    blk_bytes = rt * D * itemsize
    vmem_bytes = int(min(48 << 20, max(16 << 20, 4 * blk_bytes + 3 * rt * D * 4 + (1 << 20))))

    std_scale2 = std_scale.reshape(1, D).astype(jnp.float32)
    mean_scale2 = mean_scale.reshape(1, D).astype(jnp.float32)

    kernel = functools.partial(_ln_kernel, D=D, eps=eps)

    out = pl.pallas_call(
        kernel,
        out_shape=jax.ShapeDtypeStruct((N, D), x.dtype),
        grid_spec=pltpu.PrefetchScalarGridSpec(
            num_scalar_prefetch=0,
            grid=grid,
            in_specs=[
                pl.BlockSpec((rt, D), lambda i: (i, 0)),
                pl.BlockSpec((1, D), lambda i: (0, 0)),
                pl.BlockSpec((1, D), lambda i: (0, 0)),
            ],
            out_specs=pl.BlockSpec((rt, D), lambda i: (i, 0)),
        ),
        compiler_params=pltpu.CompilerParams(
            dimension_semantics=("parallel",),
            vmem_limit_bytes=vmem_bytes,
        ),
    )(x2, std_scale2, mean_scale2)

    return out.reshape(orig_shape)


def ln_ref(x, std_scale, mean_scale, eps=1e-9):
    mean = jnp.mean(x, axis=-1, keepdims=True)
    var = jnp.sum((x - mean) ** 2, axis=-1, keepdims=True) / (x.shape[-1] - 1)
    std = jnp.sqrt(var)
    return std_scale * ((x - mean) / (std + eps)) + mean_scale


if __name__ == "__main__":
    key = jax.random.PRNGKey(0)
    D = 512          # module default
    eps = 1e-9

    # Parameters initialized as in __init__: ones(D)
    std_scale = jnp.ones((D,), jnp.float32)
    mean_scale = jnp.ones((D,), jnp.float32)

    # Case 1: small standard ViT-like shape (B=2, S=8, D=512)
    x1 = jax.random.normal(key, (2, 8, D), dtype=jnp.float32)
    out1 = jax.block_until_ready(ln_pallas(x1, std_scale, mean_scale, eps=eps))
    ref1 = ln_ref(x1, std_scale, mean_scale, eps=eps)
    assert out1.shape == x1.shape
    assert jnp.allclose(out1, ref1, atol=1e-5, rtol=1e-5), "mismatch vs reference (case 1)"

    # Case 2: row count not a multiple of the tile -> exercises cdiv grid + masked last block
    x2 = jax.random.normal(jax.random.PRNGKey(1), (3, 5, D), dtype=jnp.float32)
    out2 = jax.block_until_ready(ln_pallas(x2, std_scale, mean_scale, eps=eps))
    ref2 = ln_ref(x2, std_scale, mean_scale, eps=eps)
    assert out2.shape == x2.shape
    assert jnp.allclose(out2, ref2, atol=1e-5, rtol=1e-5), "mismatch vs reference (case 2)"

    # Case 3: larger row count to exercise multi-step pipelining with the big tile
    x3 = jax.random.normal(jax.random.PRNGKey(2), (4, 64, D), dtype=jnp.float32)
    out3 = jax.block_until_ready(ln_pallas(x3, std_scale, mean_scale, eps=eps))
    ref3 = ln_ref(x3, std_scale, mean_scale, eps=eps)
    assert out3.shape == x3.shape
    assert jnp.allclose(out3, ref3, atol=1e-5, rtol=1e-5), "mismatch vs reference (case 3)"

    print("KERNEL_OK")
</pallas_src>

<mosaic_0001>
module attributes {stable_mosaic.version = 11 : i64} {
  func.func @_ln_kernel(%arg0: i32, %arg1: memref<8x512xf32, #tpu.memory_space<vmem>>, %arg2: memref<1x512xf32, #tpu.memory_space<vmem>>, %arg3: memref<1x512xf32, #tpu.memory_space<vmem>>, %arg4: memref<8x512xf32, #tpu.memory_space<vmem>>) attributes {dimension_semantics = [#tpu.dimension_semantics<parallel>], iteration_bounds = array<i64: 2>, scalar_prefetch = 0 : i64, scratch_operands = 0 : i64, tpu.core_type = #tpu.core_type<tc>, window_params = [{transform_indices = @transform_0, window_bounds = array<i64: 8, 512>}, {pipeline_mode = #tpu.pipeline_mode<synchronous>, transform_indices = @transform_1, window_bounds = array<i64: 1, 512>}, {pipeline_mode = #tpu.pipeline_mode<synchronous>, transform_indices = @transform_2, window_bounds = array<i64: 1, 512>}, {transform_indices = @transform_3, window_bounds = array<i64: 8, 512>}]} {
    %c0 = arith.constant 0 : index
    %c0_0 = arith.constant 0 : index
    %0 = vector.load %arg1[%c0, %c0_0] : memref<8x512xf32, #tpu.memory_space<vmem>>, vector<8x512xf32>
    %cst = arith.constant dense<0.000000e+00> : vector<8xf32>
    %1 = vector.multi_reduction <add>, %0, %cst [1] : vector<8x512xf32> to vector<8xf32>
    %2 = vector.shape_cast %1 : vector<8xf32> to vector<8x1xf32>
    %cst_1 = arith.constant 5.120000e+02 : f32
    %3 = vector.broadcast %cst_1 : f32 to vector<8x1xf32>
    %4 = arith.divf %2, %3 : vector<8x1xf32>
    %5 = vector.broadcast %4 : vector<8x1xf32> to vector<8x512xf32>
    %6 = arith.subf %0, %5 : vector<8x512xf32>
    %7 = arith.mulf %6, %6 : vector<8x512xf32>
    %cst_2 = arith.constant dense<0.000000e+00> : vector<8xf32>
    %8 = vector.multi_reduction <add>, %7, %cst_2 [1] : vector<8x512xf32> to vector<8xf32>
    %9 = vector.shape_cast %8 : vector<8xf32> to vector<8x1xf32>
    %cst_3 = arith.constant 0.00195694715 : f32
    %10 = vector.broadcast %cst_3 : f32 to vector<8x1xf32>
    %11 = arith.mulf %9, %10 : vector<8x1xf32>
    %12 = math.sqrt %11 : vector<8x1xf32>
    %cst_4 = arith.constant 9.99999971E-10 : f32
    %13 = vector.broadcast %cst_4 : f32 to vector<8x1xf32>
    %14 = arith.addf %12, %13 : vector<8x1xf32>
    %15 = tpu.reciprocal %14 : vector<8x1xf32> -> vector<8x1xf32>
    %16 = vector.broadcast %15 : vector<8x1xf32> to vector<8x512xf32>
    %17 = arith.mulf %6, %16 : vector<8x512xf32>
    %c0_5 = arith.constant 0 : index
    %c0_6 = arith.constant 0 : index
    %18 = vector.load %arg2[%c0_5, %c0_6] : memref<1x512xf32, #tpu.memory_space<vmem>>, vector<1x512xf32>
    %19 = vector.broadcast %18 : vector<1x512xf32> to vector<8x512xf32>
    %20 = arith.mulf %19, %17 : vector<8x512xf32>
    %c0_7 = arith.constant 0 : index
    %c0_8 = arith.constant 0 : index
    %21 = vector.load %arg3[%c0_7, %c0_8] : memref<1x512xf32, #tpu.memory_space<vmem>>, vector<1x512xf32>
    %22 = vector.broadcast %21 : vector<1x512xf32> to vector<8x512xf32>
    %23 = arith.addf %20, %22 : vector<8x512xf32>
    %c0_9 = arith.constant 0 : index
    %c0_10 = arith.constant 0 : index
    %24 = vector.load %arg4[%c0_9, %c0_10] : memref<8x512xf32, #tpu.memory_space<vmem>>, vector<8x512xf32>
    tpu.vector_store %arg4[%c0_9, %c0_10], %23 {strides = array<i32>} : memref<8x512xf32, #tpu.memory_space<vmem>>, vector<8x512xf32>,
    return
  }
  func.func @transform_0(%arg0: i32) -> (i32, i32) {
    %c0_i32 = arith.constant 0 : i32
    %c0_i32_0 = arith.constant 0 : i32
    return %arg0, %c0_i32 : i32, i32
  }
  func.func @transform_1(%arg0: i32) -> (i32, i32) {
    %c0_i32 = arith.constant 0 : i32
    %c0_i32_0 = arith.constant 0 : i32
    %c0_i32_1 = arith.constant 0 : i32
    return %c0_i32, %c0_i32_0 : i32, i32
  }
  func.func @transform_2(%arg0: i32) -> (i32, i32) {
    %c0_i32 = arith.constant 0 : i32
    %c0_i32_0 = arith.constant 0 : i32
    %c0_i32_1 = arith.constant 0 : i32
    return %c0_i32, %c0_i32_0 : i32, i32
  }
  func.func @transform_3(%arg0: i32) -> (i32, i32) {
    %c0_i32 = arith.constant 0 : i32
    %c0_i32_0 = arith.constant 0 : i32
    return %arg0, %c0_i32 : i32, i32
  }
}

</mosaic_0001>

<bundles_post_ra>
// kernel: tpu_custom_call.1
= control target key start
LH: loop header
LB: loop body
LE: loop exit
PB: predicated region body
PF: predicated region fallthrough
CT: control target
= control target key end

     0   :  { %8 = vsyncpa [#allocation3], 0  ;;  %s842_s0 = inlined_call_operand.hbm [shape: f32[16,512], index: 0, kind: input, shape index: {}]   ;;  %s843_s1 = inlined_call_operand.hbm [shape: f32[1,512], index: 1, kind: input, shape index: {}]   ;;  %s844_s2 = inlined_call_operand.hbm [shape: f32[1,512], index: 2, kind: input, shape index: {}]   ;;  %s845_s3 = inlined_call_operand.hbm [shape: f32[16,512], index: 3, kind: output, shape index: {}]  }
   0x1   :  { %10 = vsyncpa [#allocation3 + $0x1], 0 }
   0x2   :  { %11 = vsyncpa [#allocation6], 0 }
   0x3   :  { %12 = vsyncpa [#allocation4], 0 }
   0x4   :  { %14 = vsyncpa [#allocation4 + $0x1], 0  ;;  %s697_s12 = smov 0   ;;  %s699_s13 = smov 0  }
   0x5   :  { %s701_s14 = smov 0   ;;  %s703_s15 = smov 0  }
   0x6 LB: > { %s718_s16 = sadd.s32 4294967295, %s672_s15   ;;  %s418_s17 = sadd.s32 4294967294, %s672_s15   ;;  %s672_s15 = sphi %s703_s15, %s855_s15   ;;  %s668_s14 = sphi %s701_s14, %s854_s14   ;;  %s664_s13 = sphi %s699_s13, %s853_s13   ;;  %s660_s12 = sphi %s697_s12, %s852_s12  }
   0x7   : > { %p40_p0 = scmp.ne.s32.totalorder %s664_s13, %s660_s12  ;;  %p41_p1 = scmp.eq.s32.totalorder %s718_s16, 0 }
   0x8   : > { %p106_p2 = scmp.eq.s32.totalorder %s718_s16, 1  ;;  %p112_p3 = scmp.eq.s32.totalorder %s418_s17, 1 }
   0x9   : > { %p727_p4 = por %p41_p1, %p40_p0  ;;  %p419_p5 = scmp.ge.s32.totalorder %s672_s15, 1 }
   0xa   : > { %p732_p6 = por %p112_p3, %p40_p0  ;;  %p119_p7 = scmp.lt.s32.totalorder %s672_s15, 3 }
   0xb   : > { %s131_s22 = sshll.u32 %s843_s1, 4  ;;  %s674_s24 = smov [#allocation5]   ;;  %s132_s22 = int_to_ptr.hbm [resolvable:$true] %s131_s22 }
   0xc   : > { %p740_p8 = pnand %p419_p5, %p119_p7  ;;  %s133_s25 = sshll.u32 %s674_s24, 4  ;;  %s134_s25 = int_to_ptr.vmem [resolvable:$true] %s133_s25 }
   0xd   : > { %s143_s28 = sshll.u32 %s844_s2, 4  ;;  %s675_s29 = smov [#allocation7]   ;;  %s144_s28 = int_to_ptr.hbm [resolvable:$true] %s143_s28 }
   0xe   : > { %p450_p10 = pneg %p740_p8  ;;  %s145_s30 = sshll.u32 %s675_s29, 4  ;;  %s146_s30 = int_to_ptr.vmem [resolvable:$true] %s145_s30 }
   0xf   : > { %s753_s4 = sadd.s32 1, %s672_s15   ;;  %s27_s5 = sadd.s32 1, %s668_s14 }
  0x10   : > { %p451_p11 = pnand %p450_p10, %p41_p1  ;;  %s24_s6 = ssub.s32 %s672_s15, %s753_s4 }
  0x11   : > { %p34_p12 = scmp.ne.s32.totalorder %s668_s14, %s664_s13  ;;  %p25_p13 = scmp.eq.s32.totalorder %s24_s6, 0 }
  0x12   : > { %453 = dma.hbm_to_vmem [thread:$0]  (!%p451_p11), %s132_s22, 64, %s134_s25, [#allocation6]  }
  0x13   : > { %456 = dma.hbm_to_vmem [thread:$0]  (!%p451_p11), %s144_s28, 64, %s146_s30, [#allocation6]  }
  0x14   : > { %p35_p0 = scmp.eq.s32.totalorder %s672_s15, 0  ;;  %p763_p3 = por %p106_p2, %p34_p12 }
  0x15   : > { %p467_p5 = scmp.lt.s32.totalorder %s672_s15, 2  ;;  %s156_s9 = sand.u32 1, %s668_s14  }
  0x16   : > { %s769_s8 = scalar_select %p25_p13, %s668_s14, %s27_s5  }
  0x17   : > { %p36_p7 = por %p35_p0, %p34_p12  ;;  %s423_s10 = sshll.u32 %s156_s9, 5 }
  0x18   : > { %s436_s11 = sshll.u32 %s672_s15, 5  ;;  %s160_s22 = scalar_lea.vmem [#allocation2], %s423_s10 }
  0x19   : > { %s165_s21 = scalar_lea.hbm %s842_s0, %s436_s11  ;;  %s169_s24 = sshll.u32 %s160_s22, 4  ;;  %s170_s24 = int_to_ptr.vmem [resolvable:$true] %s169_s24 }
  0x1a   : > { %s167_s25 = sshll.u32 %s165_s21, 4  ;;  %p776_p2 = pnand %p467_p5, %p36_p7  ;;  %s168_s25 = int_to_ptr.hbm [resolvable:$true] %s167_s25 }
  0x1b   : > { %s157_s27 = scalar_lea.sflag [#allocation3], %s156_s9  ;;  %s572_s28 = sshra.s32 %s168_s25, 4  ;;  %s573_s28 = int_to_ptr.hbm [resolvable:$true] %s572_s28 }
  0x1c   : > { %s574_s29 = scalar_lea.hbm %s573_s28, 32  ;;  %p576_p11 = pneg %p776_p2 }
  0x1d   : > { %p575_p10 = scmp.ne.s32.totalorder %s573_s28, %s574_s29  ;;  %s579_s6 = scalar_lea.hbm %s842_s0, 64 }
  0x1e   : > { %p580_p0 = scmp.lt.s32.totalorder %s573_s28, %s842_s0  ;;  %p581_p5 = scmp.lt.s32.totalorder %s579_s6, %s574_s29 }
  0x1f   : > { %p577_p12 = pnand %p576_p11, %p575_p10 }
  0x20   : > { %p582_p7 = por %p581_p5, %p580_p0 }
  0x21   : > { %p578_p13 = pneg %p577_p12 }
  0x23   : > { %p583_p9 = pnand %p582_p7, %p578_p13 }
  0x25   : > { %586 = shalt.err (!%p583_p9)
}
  0x26   : > { %460 = dma.hbm_to_vmem [thread:$0]  (!%p776_p2), %s168_s25, 512, %s170_s24, %s157_s27  }
  0x27   : > { %178 = sbr.rel (%p740_p8) target bundleno = 352 (0x160), region = 32  ;;  %s793_s9 = sand.u32 (!%p740_p8), 1, %s664_s13  }
  0x28   : > { %s427_s17 = sshll.u32 (!%p740_p8), %s793_s9, 5  ;;  %s181_s20 = scalar_lea.sflag (!%p740_p8), [#allocation3], %s793_s9 }
  0x29   : > { %s184_s21 = scalar_lea.vmem (!%p740_p8), [#allocation2], %s427_s17 }
  0x2c   : > { %647 = dma.done.wait (%p727_p4), %s181_s20, 512  }
  0x2d   : > { %649 = vsyncadd (%p727_p4), %s181_s20, 4294966784 }
  0x2e   : > { %651 = dma.done.wait (%p41_p1), [#allocation6], 128  }
  0x2f   : > { %653 = vsyncadd (%p41_p1), [#allocation6], 4294967168  ;;  %v218_v0 = vld [vmem:[%s184_s21] sm:$0xff]  ;;  %v219_v1 = vld [vmem:[%s184_s21 + $0x8] sm:$0xff]  ;;  %v676_v7 = vmov 512.0   ;;  %s437_s18 = sshll.u32 %s718_s16, 5 }
  0x30   : > { %v220_v2 = vld [vmem:[%s184_s21 + $0x10] sm:$0xff]  ;;  %v222_v3 = vadd.f32 %v219_v1, %v218_v0  ;;  %v221_v4 = vld [vmem:[%s184_s21 + $0x18] sm:$0xff]  ;;  %506 = vrcp.f32 %v676_v7  ;;  %v280_v46 = vld [vmem:[#allocation5] sm:$0xf]  ;;  %s324_s24 = scalar_lea.hbm %s845_s3, %s437_s18  ;;  %s217_s16 = scalar_lea.vmem [#allocation8], %s427_s17 }
  0x31   : > { %v294_v48 = vld [vmem:[#allocation7] sm:$0xf]  ;;  %v282_v50 = vperm.slane %v280_v46, 0  ;;  %v283_v51 = vperm.slane %v280_v46, 1  ;;  %v284_v53 = vperm.slane %v280_v46, 2  ;;  %v285_v54 = vperm.slane %v280_v46, 3 }
  0x32   : > { %v223_v5 = vadd.f32 %v222_v3, %v220_v2  ;;  %v296_v56 = vperm.slane %v294_v48, 0  ;;  %v297_v57 = vperm.slane %v294_v48, 1  ;;  %v298_v58 = vperm.slane %v294_v48, 2  ;;  %s326_s25 = sshll.u32 %s217_s16, 4  ;;  %s328_s26 = sshll.u32 %s324_s24, 4  ;;  %s327_s25 = int_to_ptr.vmem [resolvable:$true] %s326_s25  ;;  %s329_s26 = int_to_ptr.hbm [resolvable:$true] %s328_s26 }
  0x33   : > { %v299_v63 = vperm.slane %v294_v48, 3  ;;  %s313_s27 = scalar_lea.sflag [#allocation4], %s793_s9  ;;  %s616_s28 = sshra.s32 %s329_s26, 4  ;;  %s617_s28 = int_to_ptr.hbm [resolvable:$true] %s616_s28 }
  0x34   : > { %v224_v6 = vadd.f32 %v223_v5, %v221_v4  ;;  %s618_s29 = scalar_lea.hbm %s617_s28, 32  ;;  %s622_s6 = scalar_lea.hbm %s845_s3, 64 }
  0x35   : > { %p619_p1 = scmp.ne.s32.totalorder %s617_s28, %s618_s29  ;;  %p623_p9 = scmp.lt.s32.totalorder %s617_s28, %s845_s3 }
  0x36   : > { %225 = vadd.xlane.f32.xlu0 %v224_v6  ;;  %v507_v8 = vpop.eup %506  ;;  %p624_p2 = scmp.lt.s32.totalorder %s622_s6, %s618_s29 }
  0x37   : > { %v228_v9 = vmul.f32 512.0, %v507_v8  ;;  %vm232_vm0 = vweird.f32 %v507_v8  ;;  %p620_p4 = pnand %p619_p1, %p763_p3 }
  0x38   : > { %p625_p10 = por %p624_p2, %p623_p9 }
  0x39   : > { %v229_v10 = vsub.f32 1.0, %v228_v9  ;;  %p621_p8 = pneg %p620_p4 }
  0x3b   : > { %v230_v11 = vmul.f32 %v507_v8, %v229_v10  ;;  %p626_p11 = pnand %p625_p10, %p621_p8 }
  0x3d   : > { %v231_v12 = vadd.f32 %v507_v8, %v230_v11 }
  0x3f   : > { %v233_v13 = vsel %vm232_vm0, %v507_v8, %v231_v12 }
  0xa9   : > { %v226_v14 = vpop.xlane.xlu0 %225 }
  0xaa   : > { %v234_v15 = vmul.f32 %v233_v13, %v226_v14 }
  0xac   : > { %v235_v16 = vsub.f32 %v218_v0, %v234_v15  ;;  %v236_v17 = vsub.f32 %v219_v1, %v234_v15  ;;  %v237_v18 = vsub.f32 %v220_v2, %v234_v15  ;;  %v238_v19 = vsub.f32 %v221_v4, %v234_v15 }
  0xae   : > { %v239_v20 = vmul.f32 %v235_v16, %v235_v16  ;;  %v240_v21 = vmul.f32 %v236_v17, %v236_v17  ;;  %v241_v22 = vmul.f32 %v237_v18, %v237_v18  ;;  %v242_v24 = vmul.f32 %v238_v19, %v238_v19 }
  0xb0   : > { %v243_v23 = vadd.f32 %v240_v21, %v239_v20 }
  0xb2   : > { %v244_v25 = vadd.f32 %v243_v23, %v241_v22 }
  0xb4   : > { %v245_v26 = vadd.f32 %v244_v25, %v242_v24 }
  0xb6   : > { %246 = vadd.xlane.f32.xlu0 %v245_v26 }
 0x129   : > { %v247_v27 = vpop.xlane.xlu0 %246 }
 0x12a   : > { %v248_v28 = vmul.f32 0.0019569471, %v247_v27 }
 0x12c   : > { %508 = vrsqrt.f32 %v248_v28  ;;  %vm256_vm1 = vcmp.eq.f32.partialorder %v248_v28, inf  ;;  %v259_v36 = vand.u32 2147483648, %v248_v28  ;;  %vm258_vm2 = vcmp.eq.f32.partialorder %v248_v28, 0.0 }
 0x132   : > { %v509_v29 = vpop.eup %508 }
 0x133   : > { %v250_v30 = vmul.f32 %v509_v29, %v248_v28 }
 0x135   : > { %v251_v31 = vmul.f32 %v509_v29, %v250_v30 }
 0x137   : > { %v252_v32 = vmul.f32 0.5, %v251_v31 }
 0x139   : > { %v253_v33 = vsub.f32 1.5, %v252_v32 }
 0x13b   : > { %v254_v34 = vmul.f32 %v509_v29, %v253_v33 }
 0x13d   : > { %v255_v35 = vmul.f32 %v254_v34, %v248_v28 }
 0x13f   : > { %v257_v37 = vsel %vm256_vm1, %v248_v28, %v255_v35 }
 0x140   : > { %v260_v38 = vsel %vm258_vm2, %v259_v36, %v257_v37 }
 0x141   : > { %v261_v39 = vadd.f32 1e-09, %v260_v38 }
 0x143   : > { %510 = vrcp.f32 %v261_v39  ;;  %v273_v43 = vand.u32 2147483648, %v261_v39  ;;  %v271_v45 = vand.u32 2147483647, %v261_v39  ;;  %vm267_vm4 = vweird.f32 %v261_v39 }
 0x145   : > { %v274_v49 = vor.u32 1.1754944e-38, %v273_v43  ;;  %vm272_vm6 = vcmp.eq.f32.partialorder %v271_v45, 8.507059e+37 }
 0x149   : > { %v511_v40 = vpop.eup %510 }
 0x14a   : > { %v263_v41 = vmul.f32 %v511_v40, %v261_v39  ;;  %vm268_vm3 = vweird.f32 %v511_v40 }
 0x14b   : > { %vm269_vm5 = vmor %vm267_vm4, %vm268_vm3 }
 0x14c   : > { %v264_v42 = vsub.f32 1.0, %v263_v41 }
 0x14e   : > { %v265_v44 = vmul.f32 %v511_v40, %v264_v42 }
 0x150   : > { %v266_v47 = vadd.f32 %v511_v40, %v265_v44 }
 0x152   : > { %v270_v52 = vsel %vm269_vm5, %v511_v40, %v266_v47 }
 0x153   : > { %v275_v55 = vsel %vm272_vm6, %v274_v49, %v270_v52 }
 0x154   : > { %v276_v59 = vmul.f32 %v275_v55, %v235_v16  ;;  %v277_v60 = vmul.f32 %v275_v55, %v236_v17  ;;  %v278_v61 = vmul.f32 %v275_v55, %v237_v18  ;;  %v279_v62 = vmul.f32 %v275_v55, %v238_v19 }
 0x156   : > { %v290_v0 = vmul.f32 %v282_v50, %v276_v59  ;;  %v291_v1 = vmul.f32 %v283_v51, %v277_v60  ;;  %v292_v2 = vmul.f32 %v284_v53, %v278_v61  ;;  %v293_v3 = vmul.f32 %v285_v54, %v279_v62 }
 0x158   : > { %v304_v4 = vadd.f32 %v296_v56, %v290_v0  ;;  %v305_v5 = vadd.f32 %v297_v57, %v291_v1  ;;  %v306_v6 = vadd.f32 %v298_v58, %v292_v2  ;;  %v307_v7 = vadd.f32 %v299_v63, %v293_v3 }
 0x15a   : > { %308 = vst [vmem:[%s217_s16] sm:$0xff] %v304_v4 }
 0x15b   : > { %309 = vst [vmem:[%s217_s16 + $0x8] sm:$0xff] %v305_v5 }
 0x15c   : > { %310 = vst [vmem:[%s217_s16 + $0x10] sm:$0xff] %v306_v6 }
 0x15d   : > { %311 = vst [vmem:[%s217_s16 + $0x18] sm:$0xff] %v307_v7 }
 0x15e   : > { %629 = shalt.err (!%p626_p11)
}
 0x15f   : > { %448 = dma.vmem_to_hbm [thread:$0]  (%p763_p3), %s327_s25, 512, %s329_s26, %s313_s27  }
 0x160 PF: > { %s340_s9 = sand.u32 1, %s660_s12   ;;  %p851_p12 = scmp.ge.s32.totalorder %s672_s15, 2 }
 0x161   : > { %s341_s17 = scalar_lea.sflag [#allocation4], %s340_s9 }
 0x162   : > { %p462_p13 = pnand %p851_p12, %p732_p6 }
 0x164   : > { %p463_p0 = pneg %p462_p13 }
 0x166   : > { %655 = dma.done.wait (%p463_p0), %s341_s17, 512  }
 0x167   : > { %657 = vsyncadd (%p463_p0), %s341_s17, 4294966784  ;;  %p17_p5 = scmp.ge.s32.totalorder %s753_s4, 4   ;;  %s852_s12 = smov %s664_s13 }
 0x168   : > { %s853_s13 = smov %s668_s14  ;;  %s854_s14 = smov %s769_s8 }
 0x169   : > { %s855_s15 = smov %s753_s4  ;;  %19 = sbr.rel (!%p17_p5) target bundleno = 6 (0x6), region = 85 }
 0x16e   :  { %347 = vsyncpa [#allocation3], 1 }
 0x16f   :  { %349 = vsyncpa [#allocation3 + $0x1], 1 }
 0x170   :  { %350 = vsyncpa [#allocation6], 1 }
 0x171   :  { %351 = vsyncpa [#allocation4], 1 }
 0x172   :  { %353 = vsyncpa [#allocation4 + $0x1], 1 }

</bundles_post_ra>
